<compile_context>
chip_gen: v7x
topology: tpu7x:2x2x1
jax: 0.10.0
libtpu: 0.0.40
codegen_flags: <defaults>
</compile_context>

<pallas_src>
import functools

import jax
import jax.numpy as jnp
from jax.experimental import pallas as pl
from jax.experimental.pallas import tpu as pltpu


def _round_up(n, m):
    return ((n + m - 1) // m) * m


def _wide_deep_kernel(xT_ref, w1T_ref, w2T_ref, vp_ref, out_ref, *,
                      h1_dim, h2_dim):
    """One batch tile (feature-major) of the fused WideDeep forward.

    xT_ref  : [C_in, TB]   bf16  (sparse emb | mask-scaled seq emb | dense), batch on lanes
    w1T_ref : [H1+1, C_in] bf16  (row H1 = wide LinearModel weight on dense rows)
    w2T_ref : [H2, H1]     bf16
    vp_ref  : [PACKH, 4]   f32   col0=b1, col1=b2, col2=deep_linear w, [0,3]=bd+bw
    out_ref : [1, TB]      f32
    """
    xT = xT_ref[...]                                            # [C_in, TB] bf16

    # --- DNN layer 1 + wide head, single MXU matmul (pooling folded in) ---
    pre = jnp.dot(w1T_ref[...], xT,
                  preferred_element_type=jnp.float32)           # [H1+1, TB] f32
    wide = pre[h1_dim:h1_dim + 1, :]                            # [1, TB]  wide logit (no bias)
    h = pre[0:h1_dim, :] + vp_ref[0:h1_dim, 0:1]                # + b1 (lane broadcast)
    h = jnp.maximum(h, 0.0)

    # --- DNN layer 2 ---
    h2 = jnp.dot(w2T_ref[...], h.astype(w2T_ref.dtype),
                 preferred_element_type=jnp.float32)            # [H2, TB]
    h2 = jnp.maximum(h2 + vp_ref[0:h2_dim, 1:2], 0.0)

    # --- deep_linear (width-1) head as a sublane reduce on VPU/XLU ---
    wd = vp_ref[0:h2_dim, 2:3]                                  # [H2, 1]
    deep = jnp.sum(h2 * wd, axis=0, keepdims=True)              # [1, TB]

    bias = vp_ref[0:1, 3:4]                                     # bd + bw

    # output = sigmoid(0.5 * (deep_outputs + wide_outputs))
    out_ref[...] = jax.nn.sigmoid(0.5 * (deep + wide + bias))


def wide_deep_forward(xT, w1T_aug, w2T, vec_pack, *, block_b=2048):
    """Batch-tiled fused forward.  xT: [C_in, B] bf16; returns [B, 1] f32."""
    c_in, B = xT.shape
    h1p1 = w1T_aug.shape[0]
    h1_dim = h1p1 - 1
    h2_dim = w2T.shape[0]

    # Big tiles (kernel is HBM/overhead-bound), but keep >= 2 grid steps when
    # possible so v7x megacore can shard the "parallel" batch axis; TB is a
    # multiple of 128 so input/output blocks are full-lane.
    half = _round_up(pl.cdiv(B, 2), 128)
    tb = max(128, min(_round_up(block_b, 128), half))
    b_pad = _round_up(B, tb)
    if b_pad != B:
        xT = jnp.pad(xT, ((0, 0), (0, b_pad - B)))
    grid = (b_pad // tb,)

    kernel = functools.partial(_wide_deep_kernel, h1_dim=h1_dim, h2_dim=h2_dim)

    # 3-deep input buffering when the grid is long enough (pipeline is
    # DMA-exposed); fall back cleanly if this jax version lacks pipeline_mode.
    x_spec = pl.BlockSpec((c_in, tb), lambda i: (0, i))
    if grid[0] >= 3:
        try:
            x_spec = pl.BlockSpec((c_in, tb), lambda i: (0, i),
                                  pipeline_mode=pl.Buffered(3))
        except TypeError:
            pass

    itemsize = xT.dtype.itemsize
    cost = pl.CostEstimate(
        flops=2 * b_pad * c_in * h1p1 + 2 * b_pad * h1_dim * h2_dim
              + 2 * b_pad * h2_dim,
        transcendentals=b_pad,
        bytes_accessed=(xT.size * itemsize
                        + w1T_aug.size * w1T_aug.dtype.itemsize
                        + w2T.size * w2T.dtype.itemsize
                        + vec_pack.size * 4
                        + b_pad * 4),
    )

    out = pl.pallas_call(
        kernel,
        grid=grid,
        in_specs=[
            x_spec,                                              # batch-tiled input
            pl.BlockSpec(w1T_aug.shape, lambda i: (0, 0)),       # VMEM-resident weights
            pl.BlockSpec(w2T.shape, lambda i: (0, 0)),
            pl.BlockSpec(vec_pack.shape, lambda i: (0, 0)),      # packed small params
        ],
        out_specs=pl.BlockSpec((1, tb), lambda i: (0, i)),       # lane-dense output
        out_shape=jax.ShapeDtypeStruct((1, b_pad), jnp.float32),
        compiler_params=pltpu.CompilerParams(
            dimension_semantics=("parallel",),                   # megacore on v7x
            vmem_limit_bytes=32 * 1024 * 1024,                   # safe on v5e/v6e/v7x
        ),
        cost_estimate=cost,
    )(xT, w1T_aug, w2T, vec_pack)
    return out[0, :B].reshape(B, 1)


def build_deep_input_t(sparse_flat, seq_emb, seq_mask, dense,
                       compute_dtype=jnp.bfloat16):
    """Feature-major deep input: [sparse | seq_emb * mask/(len+eps) | dense]^T."""
    B, L, E = seq_emb.shape
    length = jnp.sum(seq_mask, axis=1, keepdims=True)
    norm_mask = seq_mask / (length + 1e-8)                       # SequencePooling 'mean'
    seq_scaled = (seq_emb * norm_mask[:, :, None]).reshape(B, L * E)
    x = jnp.concatenate([sparse_flat, seq_scaled, dense], axis=-1)
    return x.astype(compute_dtype).T                             # [C_in, B]


def pack_wide_deep_params(w1, b1, w2, b2, wd, bd, ww, bw, *,
                          n_sparse, seq_len, emb_dim, dense_dim,
                          compute_dtype=jnp.bfloat16):
    """Row-tile the seq block of w1 (pooling fold), fold the wide head into an
    extra layer-1 output column, transpose for the feature-major kernel, and
    pack the tiny params into one [PACKH, 4] f32 array."""
    h1_dim = w1.shape[1]
    h2_dim = w2.shape[1]
    s_cols = n_sparse * emb_dim
    w1_sparse = w1[:s_cols]
    w1_seq = w1[s_cols:s_cols + emb_dim]
    w1_dense = w1[s_cols + emb_dim:]
    w1_big = jnp.concatenate(
        [w1_sparse, jnp.tile(w1_seq, (seq_len, 1)), w1_dense], axis=0)  # [C_in, H1]
    c_in = w1_big.shape[0]
    dense_start = c_in - dense_dim

    # Wide LinearModel weight as one extra MXU output column (f32-accumulated).
    wide_col = jnp.zeros((c_in, 1), jnp.float32)
    wide_col = wide_col.at[dense_start:, 0].set(jnp.reshape(ww, (-1,)))
    w1_aug = jnp.concatenate([w1_big, wide_col], axis=1)         # [C_in, H1+1]
    w1T_aug = w1_aug.T                                           # [H1+1, C_in]
    w2T = w2.T                                                   # [H2, H1]

    packh = max(h1_dim, h2_dim, 8)
    vec = jnp.zeros((packh, 4), jnp.float32)
    vec = vec.at[:h1_dim, 0].set(jnp.reshape(b1, (-1,)))
    vec = vec.at[:h2_dim, 1].set(jnp.reshape(b2, (-1,)))
    vec = vec.at[:h2_dim, 2].set(jnp.reshape(wd, (-1,)))
    vec = vec.at[0, 3].set(jnp.reshape(bd, ()) + jnp.reshape(bw, ()))
    return w1T_aug.astype(compute_dtype), w2T.astype(compute_dtype), vec


if __name__ == "__main__":
    # ---- synthetic feature-column config ----
    # sparse feats : 2 (vocab 10 and 20), embedding_dim E = 8
    # dense feat   : 1, dimension 4
    # seq sparse   : 1 (vocab 30), maxlen L = 6, combiner='mean', length_name=None
    B, L, E = 512, 6, 8
    D_DENSE = 4
    H1, H2 = 32, 16
    N_SPARSE = 2
    DEEP_IN = N_SPARSE * E + E + D_DENSE           # 28

    key = jax.random.PRNGKey(0)
    keys = jax.random.split(key, 16)

    # ---- deterministic parameter init (mirrors __init__ shapes) ----
    emb_s1 = 1e-4 * jax.random.normal(keys[0], (10, E), jnp.float32)
    emb_s2 = 1e-4 * jax.random.normal(keys[1], (20, E), jnp.float32)
    emb_sq = 1e-4 * jax.random.normal(keys[2], (30, E), jnp.float32)

    def xavier(k, shape):
        std = (2.0 / (shape[0] + shape[1])) ** 0.5
        return std * jax.random.normal(k, shape, jnp.float32)

    w1 = xavier(keys[3], (DEEP_IN, H1))
    b1 = 0.01 * jax.random.normal(keys[4], (H1,), jnp.float32)
    w2 = xavier(keys[5], (H1, H2))
    b2 = 0.01 * jax.random.normal(keys[6], (H2,), jnp.float32)
    wd = xavier(keys[7], (H2, 1))
    bd = 0.01 * jax.random.normal(keys[8], (1,), jnp.float32)
    ww = xavier(keys[9], (D_DENSE, 1))
    bw = 0.01 * jax.random.normal(keys[10], (1,), jnp.float32)

    # ---- deterministic example input matrix [B, F] (feature_pos layout) ----
    # cols: 0 sparse1 | 1 sparse2 | 2..5 dense | 6..11 seq ids (0 = padding)
    s1_idx = jax.random.randint(keys[11], (B, 1), 1, 10)
    s2_idx = jax.random.randint(keys[12], (B, 1), 1, 20)
    dense_vals = jax.random.normal(keys[13], (B, D_DENSE), jnp.float32)
    seq_len = jax.random.randint(keys[14], (B, 1), 1, L + 1)
    seq_raw = jax.random.randint(keys[15], (B, L), 1, 30)
    seq_ids = jnp.where(jnp.arange(L)[None, :] < seq_len, seq_raw, 0)
    inputs = jnp.concatenate(
        [s1_idx.astype(jnp.float32), s2_idx.astype(jnp.float32),
         dense_vals, seq_ids.astype(jnp.float32)], axis=1)      # [B, 12]

    # ---- glue: slice per feature_pos + embedding lookups (plain JAX) ----
    s1 = emb_s1[inputs[:, 0:1].astype(jnp.int32)]               # [B, 1, E]
    s2 = emb_s2[inputs[:, 1:2].astype(jnp.int32)]               # [B, 1, E]
    sparse_flat = jnp.concatenate([s1, s2], axis=-1).reshape(B, N_SPARSE * E)
    dense = inputs[:, 2:2 + D_DENSE]
    seq_ids_i = inputs[:, 2 + D_DENSE:2 + D_DENSE + L].astype(jnp.int32)
    seq_emb = emb_sq[seq_ids_i]                                 # [B, L, E]
    seq_mask = (seq_ids_i != 0).astype(jnp.float32)             # [B, L]

    # ---- pack + fused Pallas forward ----
    xT = build_deep_input_t(sparse_flat, seq_emb, seq_mask, dense)
    w1T_aug, w2T, vec_pack = pack_wide_deep_params(
        w1, b1, w2, b2, wd, bd, ww, bw,
        n_sparse=N_SPARSE, seq_len=L, emb_dim=E, dense_dim=D_DENSE)

    # large-tile path (default block_b): grid = (2,) for B=512
    out = wide_deep_forward(xT, w1T_aug, w2T, vec_pack)
    out = jax.block_until_ready(out)
    assert out.shape == (B, 1) and out.dtype == jnp.float32

    # small-tile path: grid = (4,), exercises the Buffered(3) pipeline mode
    out_small = wide_deep_forward(xT, w1T_aug, w2T, vec_pack, block_b=128)
    out_small = jax.block_until_ready(out_small)

    # ---- plain-JAX f32 reference (mirrors the PyTorch forward) ----
    hist = jnp.sum(seq_emb * seq_mask[:, :, None], axis=1)
    length = jnp.sum(seq_mask, axis=1, keepdims=True)
    pooled = hist / (length + 1e-8)
    deep_in = jnp.concatenate([sparse_flat, pooled, dense], axis=-1)
    h_ref = jnp.maximum(deep_in @ w1 + b1, 0.0)
    h_ref = jnp.maximum(h_ref @ w2 + b2, 0.0)
    ref = jax.nn.sigmoid(0.5 * ((h_ref @ wd + bd) + (dense @ ww + bw)))
    max_err = float(jnp.max(jnp.abs(out - ref)))
    max_err_small = float(jnp.max(jnp.abs(out_small - ref)))
    assert max_err < 1e-2, f"mismatch vs reference (large tile): {max_err}"
    assert max_err_small < 1e-2, f"mismatch vs reference (small tile): {max_err_small}"

    print("KERNEL_OK")
</pallas_src>

<mosaic_0001>
module attributes {stable_mosaic.version = 11 : i64} {
  func.func @_wide_deep_kernel(%arg0: i32, %arg1: memref<68x256xbf16, #tpu.memory_space<vmem>>, %arg2: memref<33x68xbf16, #tpu.memory_space<vmem>>, %arg3: memref<16x32xbf16, #tpu.memory_space<vmem>>, %arg4: memref<32x4xf32, #tpu.memory_space<vmem>>, %arg5: memref<1x256xf32, #tpu.memory_space<vmem>>) attributes {dimension_semantics = [#tpu.dimension_semantics<parallel>], iteration_bounds = array<i64: 2>, scalar_prefetch = 0 : i64, scratch_operands = 0 : i64, tpu.core_type = #tpu.core_type<tc>, window_params = [{transform_indices = @transform_0, window_bounds = array<i64: 68, 256>}, {pipeline_mode = #tpu.pipeline_mode<synchronous>, transform_indices = @transform_1, window_bounds = array<i64: 33, 68>}, {pipeline_mode = #tpu.pipeline_mode<synchronous>, transform_indices = @transform_2, window_bounds = array<i64: 16, 32>}, {pipeline_mode = #tpu.pipeline_mode<synchronous>, transform_indices = @transform_3, window_bounds = array<i64: 32, 4>}, {transform_indices = @transform_4, window_bounds = array<i64: 1, 256>}]} {
    %c0 = arith.constant 0 : index
    %c0_0 = arith.constant 0 : index
    %0 = vector.load %arg1[%c0, %c0_0] : memref<68x256xbf16, #tpu.memory_space<vmem>>, vector<68x256xbf16>
    %c0_1 = arith.constant 0 : index
    %c0_2 = arith.constant 0 : index
    %1 = vector.load %arg2[%c0_1, %c0_2] : memref<33x68xbf16, #tpu.memory_space<vmem>>, vector<33x68xbf16>
    %cst = arith.constant dense<0.000000e+00> : vector<33x256xf32>
    %2 = tpu.matmul %1, %0, %cst {dimension_numbers = #tpu.dot_dimension_numbers<[1], [0], [0], [1], [0, 0, 1, 1], [], []>} : vector<33x68xbf16>, vector<68x256xbf16>, vector<33x256xf32> -> vector<33x256xf32>
    %3 = vector.extract_strided_slice %2 {offsets = [32, 0], sizes = [1, 256], strides = [1, 1]} : vector<33x256xf32> to vector<1x256xf32>
    %4 = vector.extract_strided_slice %2 {offsets = [0, 0], sizes = [32, 256], strides = [1, 1]} : vector<33x256xf32> to vector<32x256xf32>
    %c0_3 = arith.constant 0 : index
    %c0_4 = arith.constant 0 : index
    %5 = vector.load %arg4[%c0_3, %c0_4] : memref<32x4xf32, #tpu.memory_space<vmem>>, vector<32x1xf32>
    %6 = vector.broadcast %5 : vector<32x1xf32> to vector<32x256xf32>
    %7 = arith.addf %4, %6 : vector<32x256xf32>
    %cst_5 = arith.constant 0.000000e+00 : f32
    %8 = vector.broadcast %cst_5 : f32 to vector<32x256xf32>
    %9 = arith.maximumf %7, %8 : vector<32x256xf32>
    %c0_6 = arith.constant 0 : index
    %c0_7 = arith.constant 0 : index
    %10 = vector.load %arg3[%c0_6, %c0_7] : memref<16x32xbf16, #tpu.memory_space<vmem>>, vector<16x32xbf16>
    %11 = arith.truncf %9 : vector<32x256xf32> to vector<32x256xbf16>
    %cst_8 = arith.constant dense<0.000000e+00> : vector<16x256xf32>
    %12 = tpu.matmul %10, %11, %cst_8 {dimension_numbers = #tpu.dot_dimension_numbers<[1], [0], [0], [1], [0, 0, 1, 1], [], []>} : vector<16x32xbf16>, vector<32x256xbf16>, vector<16x256xf32> -> vector<16x256xf32>
    %c0_9 = arith.constant 0 : index
    %c1 = arith.constant 1 : index
    %13 = vector.load %arg4[%c0_9, %c1] : memref<32x4xf32, #tpu.memory_space<vmem>>, vector<16x1xf32>
    %14 = vector.broadcast %13 : vector<16x1xf32> to vector<16x256xf32>
    %15 = arith.addf %12, %14 : vector<16x256xf32>
    %cst_10 = arith.constant 0.000000e+00 : f32
    %16 = vector.broadcast %cst_10 : f32 to vector<16x256xf32>
    %17 = arith.maximumf %15, %16 : vector<16x256xf32>
    %c0_11 = arith.constant 0 : index
    %c2 = arith.constant 2 : index
    %18 = vector.load %arg4[%c0_11, %c2] : memref<32x4xf32, #tpu.memory_space<vmem>>, vector<16x1xf32>
    %19 = vector.broadcast %18 : vector<16x1xf32> to vector<16x256xf32>
    %20 = arith.mulf %17, %19 : vector<16x256xf32>
    %cst_12 = arith.constant dense<0.000000e+00> : vector<256xf32>
    %21 = vector.multi_reduction <add>, %20, %cst_12 [0] : vector<16x256xf32> to vector<256xf32>
    %22 = vector.shape_cast %21 : vector<256xf32> to vector<1x256xf32>
    %c0_13 = arith.constant 0 : index
    %c3 = arith.constant 3 : index
    %23 = vector.load %arg4[%c0_13, %c3] : memref<32x4xf32, #tpu.memory_space<vmem>>, vector<1x1xf32>
    %24 = arith.addf %22, %3 : vector<1x256xf32>
    %25 = vector.broadcast %23 : vector<1x1xf32> to vector<1x256xf32>
    %26 = arith.addf %24, %25 : vector<1x256xf32>
    %cst_14 = arith.constant 5.000000e-01 : f32
    %27 = vector.broadcast %cst_14 : f32 to vector<1x256xf32>
    %28 = arith.mulf %27, %26 : vector<1x256xf32>
    %29 = arith.negf %28 : vector<1x256xf32>
    %30 = math.exp %29 : vector<1x256xf32>
    %cst_15 = arith.constant 1.000000e+00 : f32
    %31 = vector.broadcast %cst_15 : f32 to vector<1x256xf32>
    %32 = arith.addf %31, %30 : vector<1x256xf32>
    %33 = arith.divf %31, %32 : vector<1x256xf32>
    %c0_16 = arith.constant 0 : index
    %c0_17 = arith.constant 0 : index
    %34 = vector.load %arg5[%c0_16, %c0_17] : memref<1x256xf32, #tpu.memory_space<vmem>>, vector<1x256xf32>
    tpu.vector_store %arg5[%c0_16, %c0_17], %33 {strides = array<i32>} : memref<1x256xf32, #tpu.memory_space<vmem>>, vector<1x256xf32>,
    return
  }
  func.func @transform_0(%arg0: i32) -> (i32, i32) {
    %c0_i32 = arith.constant 0 : i32
    %c0_i32_0 = arith.constant 0 : i32
    return %c0_i32, %arg0 : i32, i32
  }
  func.func @transform_1(%arg0: i32) -> (i32, i32) {
    %c0_i32 = arith.constant 0 : i32
    %c0_i32_0 = arith.constant 0 : i32
    %c0_i32_1 = arith.constant 0 : i32
    return %c0_i32, %c0_i32_0 : i32, i32
  }
  func.func @transform_2(%arg0: i32) -> (i32, i32) {
    %c0_i32 = arith.constant 0 : i32
    %c0_i32_0 = arith.constant 0 : i32
    %c0_i32_1 = arith.constant 0 : i32
    return %c0_i32, %c0_i32_0 : i32, i32
  }
  func.func @transform_3(%arg0: i32) -> (i32, i32) {
    %c0_i32 = arith.constant 0 : i32
    %c0_i32_0 = arith.constant 0 : i32
    %c0_i32_1 = arith.constant 0 : i32
    return %c0_i32, %c0_i32_0 : i32, i32
  }
  func.func @transform_4(%arg0: i32) -> (i32, i32) {
    %c0_i32 = arith.constant 0 : i32
    %c0_i32_0 = arith.constant 0 : i32
    return %c0_i32, %arg0 : i32, i32
  }
}

</mosaic_0001>

<bundles_post_ra>
// kernel: tpu_custom_call.1
= control target key start
LH: loop header
LB: loop body
LE: loop exit
PB: predicated region body
PF: predicated region fallthrough
CT: control target
= control target key end

     0   :  { %9 = vsyncpa [#allocation3], 0  ;;  %s1104_s0 = inlined_call_operand.hbm [shape: bf16[68,512], index: 0, kind: input, shape index: {}]   ;;  %s1105_s1 = inlined_call_operand.vmem [shape: bf16[33,68], index: 1, kind: input, shape index: {}]   ;;  %s1106_s2 = inlined_call_operand.vmem [shape: bf16[16,32], index: 2, kind: input, shape index: {}]   ;;  %s1107_s3 = inlined_call_operand.vmem [shape: f32[32,4], index: 3, kind: input, shape index: {}]   ;;  %s1108_s4 = inlined_call_operand.hbm [shape: f32[1,512], index: 4, kind: output, shape index: {}]  }
   0x1   :  { %11 = vsyncpa [#allocation3 + $0x1], 0 }
   0x2   :  { %12 = vsyncpa [#allocation4], 0 }
   0x3   :  { %14 = vsyncpa [#allocation4 + $0x1], 0  ;;  %s909_s15 = smov 0   ;;  %s911_s16 = smov 0  }
   0x4   :  { %s913_s17 = smov 0   ;;  %s915_s18 = smov 0  }
   0x5 LB: > { %s930_s19 = sadd.s32 4294967295, %s872_s18   ;;  %s641_s20 = sadd.s32 4294967294, %s872_s18   ;;  %s872_s18 = sphi %s915_s18, %s1121_s18   ;;  %s868_s17 = sphi %s913_s17, %s1120_s17   ;;  %s864_s16 = sphi %s911_s16, %s1119_s16   ;;  %s860_s15 = sphi %s909_s15, %s1118_s15  }
   0x6   : > { %s934_s21 = sadd.s32 1, %s872_s18   ;;  %s27_s22 = sadd.s32 1, %s868_s17 }
   0x7   : > { %s24_s23 = ssub.s32 %s872_s18, %s934_s21  ;;  %p34_p0 = scmp.ne.s32.totalorder %s868_s17, %s864_s16 }
   0x8   : > { %p25_p1 = scmp.eq.s32.totalorder %s24_s23, 0  ;;  %p35_p2 = scmp.eq.s32.totalorder %s872_s18, 0 }
   0x9   : > { %p40_p3 = scmp.ne.s32.totalorder %s864_s16, %s860_s15  ;;  %p41_p4 = scmp.eq.s32.totalorder %s930_s19, 0 }
   0xa   : > { %s946_s24 = scalar_select %p25_p1, %s868_s17, %s27_s22  }
   0xb   : > { %p36_p5 = por %p35_p2, %p34_p0  ;;  %p948_p6 = por %p41_p4, %p40_p3 }
   0xc   : > { %p127_p7 = scmp.eq.s32.totalorder %s930_s19, 1  ;;  %p133_p8 = scmp.eq.s32.totalorder %s641_s20, 1 }
   0xd   : > { %p700_p10 = scmp.lt.s32.totalorder %s872_s18, 2  ;;  %s162_s28 = sand.u32 1, %s868_s17  }
   0xe   : > { %p955_p11 = por %p127_p7, %p34_p0  ;;  %p959_p12 = por %p133_p8, %p40_p3 }
   0xf   : > { %s674_s29 = sshll.u32 %s872_s18, 7  ;;  %s686_s30 = smul.u32 72, %s162_s28 }
  0x10   : > { %s1111_s26 = scalar_select %p955_p11, 1, 0 }
  0x11   : > { %s1112_s27 = scalar_select %p959_p12, 1, 0 }
  0x12   : > { %s968_s7 = scalar_lea.hbm %s1104_s0, %s674_s29  ;;  %p970_p13 = pnand %p700_p10, %p36_p5 }
  0x13   : > { %s166_s9 = scalar_lea.vmem [#allocation2], %s686_s30  ;;  %s977_s11 = scalar_lea.sflag [#allocation3], %s162_s28 }
  0x14   : > { %s173_s10 = sshll.u32 %s166_s9, 4  ;;  %s776_s12 = scalar_lea.hbm %s968_s7, 1152  ;;  %s974_s10 = int_to_ptr.vmem [resolvable:$true] %s173_s10 }
  0x15   : > { %p777_p1 = scmp.ne.s32.totalorder %s968_s7, %s776_s12  ;;  %p778_p2 = pneg %p970_p13 }
  0x16   : > { %s781_s20 = scalar_lea.hbm %s1104_s0, 2304  ;;  %p782_p5 = scmp.lt.u32.totalorder %s968_s7, %s1104_s0 }
  0x17   : > { %p779_p3 = pnand %p778_p2, %p777_p1  ;;  %p783_p7 = scmp.lt.u32.totalorder %s781_s20, %s776_s12 }
  0x18   : > { %p785_p10 = scmp.lt.u32.totalorder %s776_s12, %s968_s7 }
  0x19   : > { %p780_p4 = pneg %p779_p3  ;;  %p784_p8 = por %p783_p7, %p782_p5 }
  0x1b   : > { %p786_p9 = por %p785_p10, %p784_p8 }
  0x1d   : > { %p787_p0 = pnand %p786_p9, %p780_p4 }
  0x1f   : > { %790 = shalt.err (!%p787_p0)
}
  0x20   : > { %s791_s28 = scalar_lea.vmem %s974_s10, 1152  ;;  %s874_s29 = smov [#allocation2]  }
  0x21   : > { %p792_p1 = scmp.ne.s32.totalorder %s974_s10, %s791_s28  ;;  %s796_s30 = sshll.u32 %s874_s29, 4  ;;  %s797_s30 = int_to_ptr.vmem [resolvable:$false] %s796_s30 }
  0x22   : > { %s798_s5 = scalar_lea.vmem %s797_s30, 2304  ;;  %p799_p11 = scmp.lt.s32.totalorder %s974_s10, %s797_s30 }
  0x23   : > { %p794_p3 = pnand %p792_p1, %p778_p2  ;;  %p800_p5 = scmp.lt.s32.totalorder %s798_s5, %s791_s28 }
  0x25   : > { %p795_p12 = pneg %p794_p3  ;;  %p801_p7 = por %p800_p5, %p799_p11 }
  0x27   : > { %p802_p8 = pnand %p801_p7, %p795_p12 }
  0x29   : > { %805 = shalt.err (!%p802_p8)
}
  0x2a   : > { %s875_s6 = smov 256   ;;  %s876_s9 = smov 128  }
  0x2b   : > { %s877_s12 = smov 8   ;;  %p181_p9 = scmp.lt.s32.totalorder %s872_s18, 3 }
  0x2c   : > { %695 = dma.hbm_to_vmem [thread:$0]  (!%p970_p13), %s968_s7, 1152, %s974_s10, %s977_s11, %s875_s6, %s876_s9, %s877_s12  }
  0x2d   : > { %p1114_p0 = scmp.ge.s32.totalorder %s872_s18, 1 }
  0x2f   : > { %p182_p2 = pnand %p1114_p0, %p181_p9 }
  0x30   : > { %s1009_s13 = sand.u32 (!%p182_p2), 1, %s864_s16  }
  0x31   : > { %185 = sbr.rel (%p182_p2) target bundleno = 600 (0x258), region = 36  ;;  %s188_s20 = scalar_lea.sflag (!%p182_p2), [#allocation3], %s1009_s13 }
  0x32   : > { %s687_s14 = smul.u32 (!%p182_p2), 72, %s1009_s13 }
  0x34   : > { %s1013_s22 = scalar_lea.vmem (!%p182_p2), [#allocation2], %s687_s14 }
  0x38   : > { %851 = dma.done.wait (%p948_p6), %s188_s20, 1152  }
  0x39   : > { %853 = vsyncadd (%p948_p6), %s188_s20, 4294966144  ;;  %v878_v0 = vmov 0   ;;  %v750_v1 = vld [vmem:[%s1013_s22 + $0x4] ss:$8 sps:$4 sm:$0xff]   ;;  %v752_v2 = vld [vmem:[%s1013_s22] ss:$8 sps:$4 sm:$0xff]  }
  0x3a   : > { %340 = vmatprep.mubr.bf16.mxu0 %v878_v0  ;;  %742 = vset.pattern.permute.xlu0 %v878_v0  ;;  %v753_v3 = vld [vmem:[%s1013_s22 + $0x14] ss:$8 sps:$4 sm:$0xff]   ;;  %v755_v4 = vld [vmem:[%s1013_s22 + $0x10] ss:$8 sps:$4 sm:$0xff]   ;;  %v756_v5 = vld [vmem:[%s1013_s22 + $0x24] ss:$8 sps:$4 sm:$0xff]  }
  0x3b   : > { %743 = vset.pattern.permute.xlu1 %v878_v0  ;;  %360 = vmatprep.mubr.bf16.mxu1 %v878_v0  ;;  %v758_v6 = vld [vmem:[%s1013_s22 + $0x20] ss:$8 sps:$4 sm:$0xff]   ;;  %v759_v7 = vld [vmem:[%s1013_s22 + $0x34] ss:$8 sps:$4 sm:$0xff]   ;;  %v761_v13 = vld [vmem:[%s1013_s22 + $0x30] ss:$8 sps:$4 sm:$0xff]  }
  0x3c   : > { %308 = vmatprep.subr.bf16.mxu0 %v750_v1  ;;  %676 = vmatprep.subr.bf16.mxu1 %v750_v1  ;;  %v369_v8 = vld [vmem:[%s1107_s3] sm:$0xff]  ;;  %v370_v10 = vld [vmem:[%s1107_s3 + $0x8] sm:$0xff]  ;;  %v371_v11 = vld [vmem:[%s1107_s3 + $0x10] sm:$0xff]  ;;  %vm301_vm0 = vcmask 1041408   ;;  %vm291_vm1 = vcmask 556032   ;;  %v879_v20 = vmov 1  }
  0x3d   : > { %309 = vmatpush1.bf16.msra.mxu0 %v752_v2  ;;  %681 = vmatpush1.bf16.msra.mxu1 %v752_v2  ;;  %v227_v9 = vld [vmem:[%s1013_s22 + $0x40] sm:$0x33]  ;;  %v372_v12 = vld [vmem:[%s1107_s3 + $0x18] sm:$0xff]  ;;  %v766_v19 = vld [vmem:[%s1105_s1 + $0x10] ss:$0 sps:$4 sm:$0x11]  }
  0x3e   : > { %310 = vmatprep.subr.bf16.mxu0 %v753_v3  ;;  %677 = vmatprep.subr.bf16.mxu1 %v753_v3  ;;  %v660_v14 = vcombine.high %v227_v9, %v227_v9  ;;  %v659_v15 = vcombine.low %v227_v9, %v227_v9  ;;  %v764_v17 = vld [vmem:[%s1105_s1] sm:$0xff]   ;;  %v765_v18 = vld [vmem:[%s1105_s1 + $0x8] sm:$0xff]   ;;  %v880_v21 = vmov 2   ;;  %v881_v23 = vmov 3   ;;  %s647_s8 = sshll.u32 %s1009_s13, 1  ;;  %s675_s10 = sshll.u32 %s930_s19, 5 }
  0x3f   : > { %375 = vperm.xlu0 %742, %v369_v8   ;;  %385 = vperm.xlu1 %743, %v371_v11   ;;  %v509_v22 = vld [vmem:[%s1107_s3] sm:$0x1]  ;;  %vm432_vm2 = vcmask 261120   ;;  %s215_s11 = scalar_lea.vmem [#allocation5], %s647_s8  ;;  %s1060_s30 = scalar_lea.hbm %s1108_s4, %s675_s10 }
  0x40   : > { %v303_v16 = vsel %vm301_vm0, %v659_v15, 0  ;;  %v767_v56 = vld [vmem:[%s1106_s2] sm:$0xff]   ;;  %s571_s23 = sshll.u32 %s215_s11, 4  ;;  %s557_s5 = scalar_lea.sflag [#allocation4], %s1009_s13  ;;  %s1062_s23 = int_to_ptr.vmem [resolvable:$true] %s571_s23 }
  0x41   : > { %311 = vmatpush1.bf16.msra.mxu0 %v755_v4  ;;  %682 = vmatpush1.bf16.msra.mxu1 %v755_v4  ;;  %s806_s6 = scalar_lea.vmem %s1062_s23, 32  ;;  %p1115_p11 = scmp.ne.s32.totalorder %s1111_s26, 0 }
  0x42   : > { %312 = vmatprep.subr.bf16.mxu0 %v756_v5  ;;  %678 = vmatprep.subr.bf16.mxu1 %v756_v5  ;;  %p807_p6 = scmp.ne.s32.totalorder %s1062_s23, %s806_s6  ;;  %s883_s19 = smov [#allocation5]  }
  0x43   : > { %380 = vperm.xlu0 %742, %v370_v10   ;;  %390 = vperm.xlu1 %743, %v372_v12   ;;  %s810_s9 = sshll.u32 %s883_s19, 4  ;;  %s811_s9 = int_to_ptr.vmem [resolvable:$false] %s810_s9 }
  0x44   : > { %p808_p12 = pnand %p807_p6, %p1115_p11  ;;  %s812_s12 = scalar_lea.vmem %s811_s9, 64 }
  0x45   : > { %313 = vmatpush1.bf16.msra.mxu0 %v758_v6  ;;  %683 = vmatpush1.bf16.msra.mxu1 %v758_v6  ;;  %p813_p4 = scmp.lt.s32.totalorder %s1062_s23, %s811_s9  ;;  %p814_p10 = scmp.lt.s32.totalorder %s812_s12, %s806_s6 }
  0x46   : > { %314 = vmatprep.subr.bf16.mxu0 %v759_v7  ;;  %679 = vmatprep.subr.bf16.mxu1 %v759_v7  ;;  %p809_p13 = pneg %p808_p12 }
  0x47   : > { %745 = vset.pattern.permute.xlu1 %v879_v20  ;;  %744 = vset.pattern.permute.xlu0 %v879_v20  ;;  %p815_p1 = por %p814_p10, %p813_p4 }
  0x48   : > { %424 = vperm.xlu1 %745, %v370_v10   ;;  %419 = vperm.xlu0 %744, %v369_v8  }
  0x49   : > { %315 = vmatpush1.bf16.msra.mxu0 %v761_v13  ;;  %684 = vmatpush1.bf16.msra.mxu1 %v761_v13  ;;  %p816_p3 = pnand %p815_p1, %p809_p13 }
  0x4a   : > { %661 = vmatprep.subr.msk.bf16.mxu0 %vm301_vm0, %v660_v14  ;;  %680 = vmatprep.subr.msk.bf16.mxu1 %vm301_vm0, %v660_v14 }
  0x4c   : > { %746 = vset.pattern.permute.xlu1 %v880_v21  ;;  %747 = vset.pattern.permute.xlu0 %v880_v21 }
  0x4d   : > { %317 = vmatpush1.bf16.msra.mxu0 %v303_v16  ;;  %685 = vmatpush1.bf16.msra.mxu1 %v303_v16 }
  0x4e   : > { %484 = vperm.xlu1 %746, %v369_v8   ;;  %488 = vperm.xlu0 %747, %v370_v10  }
  0x50   : > { %662 = vmatmul.mubr.msk.bf16.vlgmr.msra.gmra.mrb[0].mxu0 %vm291_vm1, %v764_v17  ;;  %664 = vmatmul.mubr.msk.bf16.vlgmr.msra.gmra.mrb[0].mxu1 %vm291_vm1, %v766_v19 }
  0x51   : > { %350 = vmatprep.mubr.bf16.mxu0 %v878_v0  ;;  %468 = vmatprep.mubr.bf16.mxu1 %v878_v0 }
  0x52   : > { %748 = vset.pattern.permute.xlu1 %v881_v23  ;;  %749 = vset.pattern.permute.xlu0 %v881_v23 }
  0x53   : > { %514 = vperm.xlu1 %748, %v509_v22  }
  0x58   : > { %663 = vmatmul.mubr.msk.bf16.gmra.mrb[4].mxu0 %vm291_vm1, %v765_v18 }
  0xbe   : > { %v376_v24 = vpop.permute.xlu0 %375  ;;  %v386_v33 = vpop.permute.xlu1 %385 }
  0xc2   : > { %v381_v26 = vpop.permute.xlu0 %380  ;;  %v391_v44 = vpop.permute.xlu1 %390 }
  0xc7   : > { %v425_v61 = vpop.permute.xlu1 %424  ;;  %v420_v62 = vpop.permute.xlu0 %419 }
  0xcd   : > { %v485_v9 = vpop.permute.xlu1 %484  ;;  %v489_v10 = vpop.permute.xlu0 %488 }
 0x123   : > { %v342_v25 = vpop.f32.mrb[0].mxu0  ;;  %v362_v57 = vpop.f32.mrb[0].mxu1 }
 0x124   : > { %v393_v27 = vadd.f32 %v376_v24, %v342_v25  ;;  %v344_v28 = vpop.f32.mrb[1].mxu0  ;;  %v364_v58 = vpop.f32.mrb[1].mxu1 }
 0x125   : > { %v394_v29 = vadd.f32 %v376_v24, %v344_v28  ;;  %v346_v30 = vpop.f32.mrb[2].mxu0  ;;  %v366_v59 = vpop.f32.mrb[2].mxu1 }
 0x126   : > { %v395_v31 = vadd.f32 %v381_v26, %v346_v30  ;;  %v348_v32 = vpop.f32.mrb[3].mxu0  ;;  %v401_v35 = vmax.f32 %v393_v27, 0.0  ;;  %v367_v60 = vpop.f32.mrb[3].mxu1 }
 0x127   : > { %v396_v34 = vadd.f32 %v381_v26, %v348_v32  ;;  %v402_v37 = vmax.f32 %v394_v29, 0.0  ;;  %v515_v30 = vpop.permute.xlu1 %514 }
 0x128   : > { %v403_v36 = vmax.f32 %v395_v31, 0.0 }
 0x129   : > { %v404_v38 = vmax.f32 %v396_v34, 0.0 }
 0x12a   : > { %v411_v39 = vpack.c.bf16 %v403_v36, %v401_v35 }
 0x12b   : > { %v412_v40 = vpack.c.bf16 %v404_v38, %v402_v37  ;;  %v352_v41 = vpop.f32.mrb[4].mxu0 }
 0x12c   : > { %v397_v42 = vadd.f32 %v386_v33, %v352_v41  ;;  %v354_v43 = vpop.f32.mrb[5].mxu0 }
 0x12d   : > { %v398_v45 = vadd.f32 %v386_v33, %v354_v43  ;;  %v356_v46 = vpop.f32.mrb[6].mxu0  ;;  %436 = vmatprep.subr.bf16.mxu1 %v412_v40 }
 0x12e   : > { %v399_v47 = vadd.f32 %v391_v44, %v356_v46  ;;  %v358_v48 = vpop.f32.mrb[7].mxu0  ;;  %437 = vmatpush1.bf16.msra.mxu1 %v411_v39  ;;  %v405_v50 = vmax.f32 %v397_v42, 0.0  ;;  %v539_v46 = vlaneseq }
 0x12f   : > { %v400_v49 = vadd.f32 %v391_v44, %v358_v48  ;;  %v406_v52 = vmax.f32 %v398_v45, 0.0  ;;  %v882_v44 = vmov 1966171168  }
 0x130   : > { %v407_v51 = vmax.f32 %v399_v47, 0.0  ;;  %v537_v45 = vunpack.c.l.s4 %v882_v44  ;;  %v540_v48 = vshrl.u32 %v539_v46, 7  ;;  %vm553_vm3 = vcmp.lt.s32.totalorder %v539_v46, 256 }
 0x131   : > { %v408_v53 = vmax.f32 %v400_v49, 0.0 }
 0x132   : > { %v413_v54 = vpack.c.bf16 %v407_v51, %v405_v50  ;;  %v538_v47 = vunpack.c.0.s8 %v537_v45 }
 0x133   : > { %v414_v55 = vpack.c.bf16 %v408_v53, %v406_v52 }
 0x134   : > { %v541_v50 = vsub.s32 %v538_v47, %v540_v48 }
 0x135   : > { %438 = vmatprep.subr.bf16.mxu1 %v414_v55 }
 0x136   : > { %439 = vmatpush1.bf16.msra.mxu1 %v413_v54 }
 0x139   : > { %666 = vmatmul.mubr.msk.bf16.vlgmr.msra.gmra.mrb[4].mxu1 %vm432_vm2, %v767_v56 }
 0x20c   : > { %v470_v63 = vpop.f32.mrb[4].mxu1 }
 0x20d   : > { %v471_v0 = vadd.f32 %v470_v63, %v420_v62  ;;  %v472_v1 = vpop.f32.mrb[5].mxu1 }
 0x20e   : > { %v473_v2 = vadd.f32 %v472_v1, %v420_v62  ;;  %v474_v3 = vpop.f32.mrb[6].mxu1 }
 0x20f   : > { %v479_v4 = vmax.f32 %v471_v0, 0.0  ;;  %v475_v5 = vadd.f32 %v474_v3, %v425_v61  ;;  %v476_v6 = vpop.f32.mrb[7].mxu1 }
 0x210   : > { %v480_v7 = vmax.f32 %v473_v2, 0.0  ;;  %v477_v8 = vadd.f32 %v476_v6, %v425_v61 }
 0x211   : > { %v481_v11 = vmax.f32 %v475_v5, 0.0  ;;  %v491_v13 = vmul.f32 %v485_v9, %v479_v4 }
 0x212   : > { %v482_v12 = vmax.f32 %v477_v8, 0.0  ;;  %v492_v15 = vmul.f32 %v485_v9, %v480_v7 }
 0x213   : > { %v493_v14 = vmul.f32 %v489_v10, %v481_v11 }
 0x214   : > { %v494_v16 = vmul.f32 %v489_v10, %v482_v12 }
 0x215   : > { %v495_v17 = vadd.f32 %v493_v14, %v491_v13 }
 0x216   : > { %v502_v18 = vadd.f32 %v494_v16, %v492_v15 }
 0x217   : > { %v496_v19 = vrot.slane %v495_v17, 4 }
 0x218   : > { %v503_v20 = vrot.slane %v502_v18, 4 }
 0x219   : > { %v497_v21 = vadd.f32 %v496_v19, %v495_v17 }
 0x21a   : > { %v504_v22 = vadd.f32 %v503_v20, %v502_v18 }
 0x21b   : > { %v498_v23 = vrot.slane %v497_v21, 2 }
 0x21c   : > { %v505_v24 = vrot.slane %v504_v22, 2 }
 0x21d   : > { %v499_v25 = vadd.f32 %v498_v23, %v497_v21 }
 0x21e   : > { %v506_v26 = vadd.f32 %v505_v24, %v504_v22 }
 0x21f   : > { %v500_v27 = vrot.slane %v499_v25, 1 }
 0x220   : > { %v507_v28 = vrot.slane %v506_v26, 1 }
 0x221   : > { %v501_v29 = vadd.f32 %v500_v27, %v499_v25 }
 0x222   : > { %v508_v31 = vadd.f32 %v507_v28, %v506_v26 }
 0x223   : > { %v510_v32 = vadd.f32 %v501_v29, %v362_v57 }
 0x224   : > { %v511_v33 = vadd.f32 %v508_v31, %v364_v58 }
 0x225   : > { %v517_v34 = vadd.f32 %v515_v30, %v510_v32 }
 0x226   : > { %v518_v35 = vadd.f32 %v515_v30, %v511_v33 }
 0x227   : > { %v667_v36 = vmul.f32 -0.5, %v517_v34 }
 0x228   : > { %v668_v37 = vmul.f32 -0.5, %v518_v35 }
 0x229   : > { %v523_v38 = vmul.f32 1.442695, %v667_v36 }
 0x22a   : > { %v525_v39 = vmul.f32 1.442695, %v668_v37 }
 0x22b   : > { %768 = vpow2.f32 %v523_v38 }
 0x22c   : > { %770 = vpow2.f32 %v525_v39 }
 0x235   : > { %v769_v40 = vpop.eup %768 }
 0x236   : > { %v771_v41 = vpop.eup %770  ;;  %v527_v42 = vadd.f32 1.0, %v769_v40 }
 0x237   : > { %v528_v43 = vadd.f32 1.0, %v771_v41 }
 0x238   : > { %772 = vrcp.f32 %v527_v42 }
 0x239   : > { %774 = vrcp.f32 %v528_v43 }
 0x242   : > { %v773_v49 = vpop.eup %772 }
 0x243   : > { %v775_v51 = vpop.eup %774 }
 0x244   : > { %v535_v52 = vcombine.low %v773_v49, %v775_v51 }
 0x246   : > { %v542_v53 = vrot.slane %v535_v52, %v541_v50 }
 0x248   : > { %v549_v54 = vrot.slane %v542_v53, %v541_v50 }
 0x24a   : > { %555 = vst.msk [vmem:[%s215_s11] sm:$0x3] %vm553_vm3, %v549_v54 }
 0x24b   : > { %819 = shalt.err (!%p816_p3)
}
 0x24c   : > { %s820_s13 = scalar_lea.hbm %s1060_s30, 32  ;;  %s824_s22 = scalar_lea.hbm %s1108_s4, 64 }
 0x24d   : > { %p821_p5 = scmp.ne.s32.totalorder %s1060_s30, %s820_s13  ;;  %p825_p9 = scmp.lt.u32.totalorder %s1060_s30, %s1108_s4 }
 0x24e   : > { %p826_p0 = scmp.lt.u32.totalorder %s824_s22, %s820_s13  ;;  %p828_p6 = scmp.lt.u32.totalorder %s820_s13, %s1060_s30 }
 0x24f   : > { %p822_p7 = pnand %p821_p5, %p1115_p11 }
 0x250   : > { %p827_p2 = por %p826_p0, %p825_p9 }
 0x251   : > { %p823_p8 = pneg %p822_p7 }
 0x252   : > { %p829_p12 = por %p828_p6, %p827_p2 }
 0x254   : > { %p830_p13 = pnand %p829_p12, %p823_p8 }
 0x256   : > { %833 = shalt.err (!%p830_p13)
}
 0x257   : > { %690 = dma.vmem_to_hbm [thread:$0]  (%p1115_p11), %s1062_s23, 32, %s1060_s30, %s557_s5  }
 0x258 PF: > { %s583_s8 = sand.u32 1, %s860_s15   ;;  %p1116_p4 = scmp.ne.s32.totalorder %s1112_s27, 0 }
 0x259   : > { %p1117_p10 = scmp.ge.s32.totalorder %s872_s18, 2  ;;  %s584_s10 = scalar_lea.sflag [#allocation4], %s583_s8 }
 0x25b   : > { %p697_p1 = pnand %p1117_p10, %p1116_p4 }
 0x25d   : > { %855 = dma.done.wait (!%p697_p1), %s584_s10, 32  }
 0x25e   : > { %857 = vsyncadd (!%p697_p1), %s584_s10, 4294967264  ;;  %p17_p3 = scmp.ge.s32.totalorder %s934_s21, 4   ;;  %s1118_s15 = smov %s864_s16 }
 0x25f   : > { %s1119_s16 = smov %s868_s17  ;;  %s1120_s17 = smov %s946_s24 }
 0x260   : > { %s1121_s18 = smov %s934_s21  ;;  %19 = sbr.rel (!%p17_p3) target bundleno = 5 (0x5), region = 81 }
 0x267   :  { %589 = vsyncpa [#allocation3], 1 }
 0x268   :  { %591 = vsyncpa [#allocation3 + $0x1], 1 }
 0x269   :  { %592 = vsyncpa [#allocation4], 1 }
 0x26a   :  { %594 = vsyncpa [#allocation4 + $0x1], 1 }

</bundles_post_ra>
